<compile_context>
chip_gen: v7x
topology: tpu7x:2x2x1
jax: 0.10.0
libtpu: 0.0.40
codegen_flags: <defaults>
</compile_context>

<pallas_src>
import functools

import jax
import jax.numpy as jnp
from jax.experimental import pallas as pl
from jax.experimental.pallas import tpu as pltpu


def _round_up(x, m):
    return ((x + m - 1) // m) * m


def _softplus(x, beta, inv_beta):
    # torch.nn.Softplus(beta=beta, threshold=50):
    #   out = (1/beta) * log(1 + exp(beta*x)),  but out = x where beta*x > 50
    bx = beta * x
    safe_bx = jnp.minimum(bx, 50.0)               # avoid exp overflow
    sp = jnp.log1p(jnp.exp(safe_bx)) * inv_beta   # mul by constant, not divide
    return jnp.where(bx > 50.0, x, sp)


def _make_controller_kernel(activations, num_layers, use_saturation, ctrl_sat,
                            beta_sfpl):
    inv_beta = 1.0 / beta_sfpl

    def kernel(x_ref, *refs):
        # refs = (w0, b0, w1, b1, ..., out_ref)
        param_refs = refs[:-1]
        o_ref = refs[-1]

        u = x_ref[...].astype(jnp.float32)
        for idx in range(num_layers):
            w = param_refs[2 * idx][...]          # [in_pad, out_pad]
            b = param_refs[2 * idx + 1][...]      # [1, out_pad] f32
            uhat = jnp.dot(u.astype(w.dtype), w,
                           preferred_element_type=jnp.float32) + b
            if idx < len(activations):
                act = activations[idx]
                if act == "tanh":
                    u = jnp.tanh(uhat)
                elif act == "pow2":
                    u = uhat * uhat
                elif act == "sfpl":
                    u = _softplus(uhat, beta_sfpl, inv_beta)
                elif act == "linear":
                    u = uhat
                else:
                    raise ValueError(f"Not Implemented Activation Function {act}.")
            else:
                u = uhat

        if use_saturation:
            u = ctrl_sat * jnp.tanh(u)

        o_ref[...] = u.astype(o_ref.dtype)

    return kernel


def extracted_controller_forward(x, weights, biases, activations,
                                 use_saturation=False, ctrl_sat=1.0,
                                 beta_sfpl=1.0, param_dtype=jnp.float32,
                                 batch_tile=512):
    """Run the controller MLP in a single Pallas TPU kernel.

    x:       [batch, state_dim] float32
    weights: list of [in_dim, out_dim] float32 (already transposed vs PyTorch)
    biases:  list of [out_dim] float32
    """
    num_layers = len(weights)
    batch, state_dim = x.shape
    control_dim = weights[-1].shape[1]

    # ---- pad feature dims to lane-dense (multiples of 128) ----------------
    layer_in = [state_dim] + [w.shape[1] for w in weights[:-1]]
    layer_out = [w.shape[1] for w in weights]
    in_pads = [_round_up(d, 128) for d in layer_in]
    out_pads = [_round_up(d, 128) for d in layer_out]

    params = []
    for li, (w, b) in enumerate(zip(weights, biases)):
        din, dout = w.shape
        ip, op = in_pads[li], out_pads[li]
        w_pad = jnp.zeros((ip, op), jnp.float32).at[:din, :dout].set(
            w.astype(jnp.float32)).astype(param_dtype)
        b_pad = jnp.zeros((1, op), jnp.float32).at[0, :dout].set(
            b.astype(jnp.float32))
        params.append(w_pad)
        params.append(b_pad)

    # ---- pad / tile the batch axis ---------------------------------------
    batch_p = _round_up(batch, 8)
    tb = min(batch_tile, batch_p)
    tb = _round_up(tb, 8)
    batch_p = _round_up(batch_p, tb)
    nb = batch_p // tb

    x_pad = jnp.zeros((batch_p, in_pads[0]), jnp.float32)
    x_pad = x_pad.at[:batch, :state_dim].set(x.astype(jnp.float32))
    x_pad = x_pad.astype(param_dtype)

    kernel = _make_controller_kernel(tuple(activations), num_layers,
                                     use_saturation, float(ctrl_sat),
                                     float(beta_sfpl))

    # x / out blocks advance along the batch grid axis; weights & biases use a
    # constant index_map so they stay resident in VMEM across all grid steps.
    in_specs = [pl.BlockSpec((tb, in_pads[0]), lambda i: (i, 0))]
    for li in range(num_layers):
        in_specs.append(pl.BlockSpec((in_pads[li], out_pads[li]),
                                     lambda i: (0, 0)))
        in_specs.append(pl.BlockSpec((1, out_pads[li]), lambda i: (0, 0)))
    out_spec = pl.BlockSpec((tb, out_pads[-1]), lambda i: (i, 0))

    out_padded = pl.pallas_call(
        kernel,
        out_shape=jax.ShapeDtypeStruct((batch_p, out_pads[-1]), jnp.float32),
        grid_spec=pltpu.PrefetchScalarGridSpec(
            num_scalar_prefetch=0,
            grid=(nb,),
            in_specs=in_specs,
            out_specs=out_spec),
        compiler_params=pltpu.CompilerParams(
            dimension_semantics=("parallel",)),
    )(x_pad, *params)

    return out_padded[:batch, :control_dim]


def _reference_forward(x, weights, biases, activations, use_saturation,
                       ctrl_sat, beta_sfpl):
    u = x
    inv_beta = 1.0 / beta_sfpl
    for idx, (w, b) in enumerate(zip(weights, biases)):
        uhat = u @ w + b
        if idx < len(activations):
            act = activations[idx]
            if act == "tanh":
                u = jnp.tanh(uhat)
            elif act == "pow2":
                u = uhat ** 2
            elif act == "sfpl":
                u = _softplus(uhat, beta_sfpl, inv_beta)
            elif act == "linear":
                u = uhat
        else:
            u = uhat
    if use_saturation:
        u = ctrl_sat * jnp.tanh(u)
    return u


if __name__ == "__main__":
    key = jax.random.PRNGKey(0)

    # Small controller: state_dim=4, hidden_dims=[32, 32], control_dim=2.
    state_dim = 4
    hidden_dims = [32, 32]
    control_dim = 2
    activations = ["tanh", "sfpl"]      # third (output) layer has no activation
    use_saturation = True
    ctrl_sat = 1.5
    beta_sfpl = 1.0
    batch = 8

    layer_dims = [state_dim] + hidden_dims + [control_dim]

    # Deterministic parameter init (mimics nn.Linear's U(-1/sqrt(in), 1/sqrt(in))).
    weights, biases = [], []
    for i in range(len(layer_dims) - 1):
        din, dout = layer_dims[i], layer_dims[i + 1]
        key, kw, kb = jax.random.split(key, 3)
        bound = 1.0 / jnp.sqrt(din)
        # Stored as [in, out] (transpose of PyTorch's [out, in]).
        weights.append(jax.random.uniform(kw, (din, dout), jnp.float32,
                                          -bound, bound))
        biases.append(jax.random.uniform(kb, (dout,), jnp.float32,
                                         -bound, bound))

    key, kx = jax.random.split(key)
    x = jax.random.normal(kx, (batch, state_dim), jnp.float32)

    out = extracted_controller_forward(x, weights, biases, activations,
                                       use_saturation=use_saturation,
                                       ctrl_sat=ctrl_sat,
                                       beta_sfpl=beta_sfpl,
                                       param_dtype=jnp.float32)
    out = jax.block_until_ready(out)

    ref = _reference_forward(x, weights, biases, activations, use_saturation,
                             ctrl_sat, beta_sfpl)
    assert out.shape == (batch, control_dim)
    assert jnp.allclose(out, ref, atol=1e-5, rtol=1e-5), "mismatch vs reference"

    print("KERNEL_OK")
</pallas_src>

<mosaic_0001>
module attributes {stable_mosaic.version = 11 : i64} {
  func.func @kernel(%arg0: i32, %arg1: memref<8x128xf32, #tpu.memory_space<vmem>>, %arg2: memref<128x128xf32, #tpu.memory_space<vmem>>, %arg3: memref<1x128xf32, #tpu.memory_space<vmem>>, %arg4: memref<128x128xf32, #tpu.memory_space<vmem>>, %arg5: memref<1x128xf32, #tpu.memory_space<vmem>>, %arg6: memref<128x128xf32, #tpu.memory_space<vmem>>, %arg7: memref<1x128xf32, #tpu.memory_space<vmem>>, %arg8: memref<8x128xf32, #tpu.memory_space<vmem>>) attributes {dimension_semantics = [#tpu.dimension_semantics<parallel>], iteration_bounds = array<i64: 1>, scalar_prefetch = 0 : i64, scratch_operands = 0 : i64, tpu.core_type = #tpu.core_type<tc>, window_params = [{transform_indices = @transform_0, window_bounds = array<i64: 8, 128>}, {pipeline_mode = #tpu.pipeline_mode<synchronous>, transform_indices = @transform_1, window_bounds = array<i64: 128, 128>}, {pipeline_mode = #tpu.pipeline_mode<synchronous>, transform_indices = @transform_2, window_bounds = array<i64: 1, 128>}, {pipeline_mode = #tpu.pipeline_mode<synchronous>, transform_indices = @transform_3, window_bounds = array<i64: 128, 128>}, {pipeline_mode = #tpu.pipeline_mode<synchronous>, transform_indices = @transform_4, window_bounds = array<i64: 1, 128>}, {pipeline_mode = #tpu.pipeline_mode<synchronous>, transform_indices = @transform_5, window_bounds = array<i64: 128, 128>}, {pipeline_mode = #tpu.pipeline_mode<synchronous>, transform_indices = @transform_6, window_bounds = array<i64: 1, 128>}, {transform_indices = @transform_7, window_bounds = array<i64: 8, 128>}]} {
    %c0 = arith.constant 0 : index
    %c0_0 = arith.constant 0 : index
    %0 = vector.load %arg1[%c0, %c0_0] : memref<8x128xf32, #tpu.memory_space<vmem>>, vector<8x128xf32>
    %c0_1 = arith.constant 0 : index
    %c0_2 = arith.constant 0 : index
    %1 = vector.load %arg2[%c0_1, %c0_2] : memref<128x128xf32, #tpu.memory_space<vmem>>, vector<128x128xf32>
    %c0_3 = arith.constant 0 : index
    %c0_4 = arith.constant 0 : index
    %2 = vector.load %arg3[%c0_3, %c0_4] : memref<1x128xf32, #tpu.memory_space<vmem>>, vector<1x128xf32>
    %cst = arith.constant dense<0.000000e+00> : vector<8x128xf32>
    %3 = tpu.matmul %0, %1, %cst {dimension_numbers = #tpu.dot_dimension_numbers<[1], [0], [0], [1], [0, 0, 1, 1], [], []>} : vector<8x128xf32>, vector<128x128xf32>, vector<8x128xf32> -> vector<8x128xf32>
    %4 = vector.broadcast %2 : vector<1x128xf32> to vector<8x128xf32>
    %5 = arith.addf %3, %4 : vector<8x128xf32>
    %6 = math.tanh %5 : vector<8x128xf32>
    %c0_5 = arith.constant 0 : index
    %c0_6 = arith.constant 0 : index
    %7 = vector.load %arg4[%c0_5, %c0_6] : memref<128x128xf32, #tpu.memory_space<vmem>>, vector<128x128xf32>
    %c0_7 = arith.constant 0 : index
    %c0_8 = arith.constant 0 : index
    %8 = vector.load %arg5[%c0_7, %c0_8] : memref<1x128xf32, #tpu.memory_space<vmem>>, vector<1x128xf32>
    %cst_9 = arith.constant dense<0.000000e+00> : vector<8x128xf32>
    %9 = tpu.matmul %6, %7, %cst_9 {dimension_numbers = #tpu.dot_dimension_numbers<[1], [0], [0], [1], [0, 0, 1, 1], [], []>} : vector<8x128xf32>, vector<128x128xf32>, vector<8x128xf32> -> vector<8x128xf32>
    %10 = vector.broadcast %8 : vector<1x128xf32> to vector<8x128xf32>
    %11 = arith.addf %9, %10 : vector<8x128xf32>
    %cst_10 = arith.constant 1.000000e+00 : f32
    %12 = vector.broadcast %cst_10 : f32 to vector<8x128xf32>
    %13 = arith.mulf %12, %11 : vector<8x128xf32>
    %cst_11 = arith.constant 5.000000e+01 : f32
    %14 = vector.broadcast %cst_11 : f32 to vector<8x128xf32>
    %15 = arith.minimumf %13, %14 : vector<8x128xf32>
    %16 = math.exp %15 : vector<8x128xf32>
    %17 = math.log1p %16 : vector<8x128xf32>
    %cst_12 = arith.constant 1.000000e+00 : f32
    %18 = vector.broadcast %cst_12 : f32 to vector<8x128xf32>
    %19 = arith.mulf %17, %18 : vector<8x128xf32>
    %cst_13 = arith.constant 5.000000e+01 : f32
    %20 = vector.broadcast %cst_13 : f32 to vector<8x128xf32>
    %21 = arith.cmpf ogt, %13, %20 : vector<8x128xf32>
    %22 = arith.select %21, %11, %19 : vector<8x128xi1>, vector<8x128xf32>
    %c0_14 = arith.constant 0 : index
    %c0_15 = arith.constant 0 : index
    %23 = vector.load %arg6[%c0_14, %c0_15] : memref<128x128xf32, #tpu.memory_space<vmem>>, vector<128x128xf32>
    %c0_16 = arith.constant 0 : index
    %c0_17 = arith.constant 0 : index
    %24 = vector.load %arg7[%c0_16, %c0_17] : memref<1x128xf32, #tpu.memory_space<vmem>>, vector<1x128xf32>
    %cst_18 = arith.constant dense<0.000000e+00> : vector<8x128xf32>
    %25 = tpu.matmul %22, %23, %cst_18 {dimension_numbers = #tpu.dot_dimension_numbers<[1], [0], [0], [1], [0, 0, 1, 1], [], []>} : vector<8x128xf32>, vector<128x128xf32>, vector<8x128xf32> -> vector<8x128xf32>
    %26 = vector.broadcast %24 : vector<1x128xf32> to vector<8x128xf32>
    %27 = arith.addf %25, %26 : vector<8x128xf32>
    %28 = math.tanh %27 : vector<8x128xf32>
    %cst_19 = arith.constant 1.500000e+00 : f32
    %29 = vector.broadcast %cst_19 : f32 to vector<8x128xf32>
    %30 = arith.mulf %29, %28 : vector<8x128xf32>
    %c0_20 = arith.constant 0 : index
    %c0_21 = arith.constant 0 : index
    %31 = vector.load %arg8[%c0_20, %c0_21] : memref<8x128xf32, #tpu.memory_space<vmem>>, vector<8x128xf32>
    tpu.vector_store %arg8[%c0_20, %c0_21], %30 {strides = array<i32>} : memref<8x128xf32, #tpu.memory_space<vmem>>, vector<8x128xf32>,
    return
  }
  func.func @transform_0(%arg0: i32) -> (i32, i32) {
    %c0_i32 = arith.constant 0 : i32
    %c0_i32_0 = arith.constant 0 : i32
    return %arg0, %c0_i32 : i32, i32
  }
  func.func @transform_1(%arg0: i32) -> (i32, i32) {
    %c0_i32 = arith.constant 0 : i32
    %c0_i32_0 = arith.constant 0 : i32
    %c0_i32_1 = arith.constant 0 : i32
    return %c0_i32, %c0_i32_0 : i32, i32
  }
  func.func @transform_2(%arg0: i32) -> (i32, i32) {
    %c0_i32 = arith.constant 0 : i32
    %c0_i32_0 = arith.constant 0 : i32
    %c0_i32_1 = arith.constant 0 : i32
    return %c0_i32, %c0_i32_0 : i32, i32
  }
  func.func @transform_3(%arg0: i32) -> (i32, i32) {
    %c0_i32 = arith.constant 0 : i32
    %c0_i32_0 = arith.constant 0 : i32
    %c0_i32_1 = arith.constant 0 : i32
    return %c0_i32, %c0_i32_0 : i32, i32
  }
  func.func @transform_4(%arg0: i32) -> (i32, i32) {
    %c0_i32 = arith.constant 0 : i32
    %c0_i32_0 = arith.constant 0 : i32
    %c0_i32_1 = arith.constant 0 : i32
    return %c0_i32, %c0_i32_0 : i32, i32
  }
  func.func @transform_5(%arg0: i32) -> (i32, i32) {
    %c0_i32 = arith.constant 0 : i32
    %c0_i32_0 = arith.constant 0 : i32
    %c0_i32_1 = arith.constant 0 : i32
    return %c0_i32, %c0_i32_0 : i32, i32
  }
  func.func @transform_6(%arg0: i32) -> (i32, i32) {
    %c0_i32 = arith.constant 0 : i32
    %c0_i32_0 = arith.constant 0 : i32
    %c0_i32_1 = arith.constant 0 : i32
    return %c0_i32, %c0_i32_0 : i32, i32
  }
  func.func @transform_7(%arg0: i32) -> (i32, i32) {
    %c0_i32 = arith.constant 0 : i32
    %c0_i32_0 = arith.constant 0 : i32
    return %arg0, %c0_i32 : i32, i32
  }
}

</mosaic_0001>

<bundles_post_ra>
// kernel: tpu_custom_call.1
= control target key start
LH: loop header
LB: loop body
LE: loop exit
PB: predicated region body
PF: predicated region fallthrough
CT: control target
= control target key end

     0   :  { %12 = vsyncpa [#allocation3], 0  ;;  %s920_s0 = inlined_call_operand.hbm [shape: f32[8,128], index: 0, kind: input, shape index: {}]   ;;  %s921_s1 = inlined_call_operand.hbm [shape: f32[128,128], index: 1, kind: input, shape index: {}]   ;;  %s922_s2 = inlined_call_operand.vmem [shape: f32[1,128], index: 2, kind: input, shape index: {}]   ;;  %s923_s3 = inlined_call_operand.hbm [shape: f32[128,128], index: 3, kind: input, shape index: {}]   ;;  %s924_s4 = inlined_call_operand.vmem [shape: f32[1,128], index: 4, kind: input, shape index: {}]   ;;  %s925_s5 = inlined_call_operand.hbm [shape: f32[128,128], index: 5, kind: input, shape index: {}]   ;;  %s926_s6 = inlined_call_operand.vmem [shape: f32[1,128], index: 6, kind: input, shape index: {}]   ;;  %s927_s7 = inlined_call_operand.hbm [shape: f32[8,128], index: 7, kind: output, shape index: {}]  }
   0x1   :  { %13 = vsyncpa [#allocation6], 0 }
   0x2   :  { %14 = vsyncpa [#allocation9], 0 }
   0x3   :  { %15 = vsyncpa [#allocation4], 0  ;;  %s762_s24 = smov [#allocation5]   ;;  %s644_s28 = scalar_lea.hbm %s921_s1, 2048 }
   0x4   :  { %s31_s25 = sshll.u32 %s762_s24, 4  ;;  %p645_p0 = scmp.ne.s32.totalorder %s921_s1, %s644_s28  ;;  %s32_s25 = int_to_ptr.vmem [resolvable:$true] %s31_s25 }
   0x5   :  { %p648_p1 = scmp.lt.u32.totalorder %s644_s28, %s921_s1 }
   0x7   :  { %p650_p2 = pnand %p648_p1, %p645_p0 }
   0x9   :  { %653 = shalt.err (!%p650_p2)
}
   0xa   :  { %s654_s10 = scalar_lea.vmem %s32_s25, 2048  ;;  %p659_p4 = scmp.lt.s32.totalorder %s32_s25, %s32_s25 }
   0xb   :  { %p655_p3 = scmp.ne.s32.totalorder %s32_s25, %s654_s10  ;;  %p660_p5 = scmp.lt.s32.totalorder %s654_s10, %s654_s10 }
   0xd   :  { %p661_p6 = por %p660_p5, %p659_p4 }
   0xf   :  { %p662_p7 = pnand %p661_p6, %p655_p3 }
  0x11   :  { %665 = shalt.err (!%p662_p7)
}
  0x12   :  { %s763_s11 = smov 128   ;;  %s764_s12 = smov 8  }
  0x13   :  { %37 = dma.hbm_to_vmem [thread:$0]  %s921_s1, 2048, %s32_s25, [#allocation6], %s763_s11, %s763_s11, %s764_s12  }
  0x14   :  { %s765_s15 = smov [#allocation2]   ;;  %s766_s17 = smov [#allocation7]  }
  0x15   :  { %s22_s16 = sshll.u32 %s765_s15, 4  ;;  %s45_s18 = sshll.u32 %s766_s17, 4  ;;  %s23_s16 = int_to_ptr.vmem [resolvable:$true] %s22_s16  ;;  %s46_s18 = int_to_ptr.vmem [resolvable:$true] %s45_s18 }
  0x16   :  { %s666_s21 = scalar_lea.hbm %s920_s0, 128 }
  0x17   :  { %p667_p8 = scmp.ne.s32.totalorder %s920_s0, %s666_s21  ;;  %p670_p9 = scmp.lt.u32.totalorder %s666_s21, %s920_s0 }
  0x19   :  { %p672_p10 = pnand %p670_p9, %p667_p8 }
  0x1b   :  { %675 = shalt.err (!%p672_p10)
}
  0x1c   :  { %s676_s1 = scalar_lea.vmem %s23_s16, 128  ;;  %p681_p12 = scmp.lt.s32.totalorder %s23_s16, %s23_s16 }
  0x1d   :  { %p677_p11 = scmp.ne.s32.totalorder %s23_s16, %s676_s1  ;;  %p682_p13 = scmp.lt.s32.totalorder %s676_s1, %s676_s1 }
  0x1f   :  { %p683_p0 = por %p682_p13, %p681_p12 }
  0x21   :  { %p684_p1 = pnand %p683_p0, %p677_p11 }
  0x23   :  { %687 = shalt.err (!%p684_p1)
}
  0x24   :  { %25 = dma.hbm_to_vmem [thread:$0]  %s920_s0, 128, %s23_s16, [#allocation3]  }
  0x25   :  { %s688_s30 = scalar_lea.hbm %s923_s3, 2048 }
  0x26   :  { %p689_p2 = scmp.ne.s32.totalorder %s923_s3, %s688_s30  ;;  %p692_p3 = scmp.lt.u32.totalorder %s688_s30, %s923_s3 }
  0x28   :  { %p694_p4 = pnand %p692_p3, %p689_p2 }
  0x2a   :  { %697 = shalt.err (!%p694_p4)
}
  0x2b   :  { %s698_s14 = scalar_lea.vmem %s46_s18, 2048  ;;  %p703_p6 = scmp.lt.s32.totalorder %s46_s18, %s46_s18 }
  0x2c   :  { %p699_p5 = scmp.ne.s32.totalorder %s46_s18, %s698_s14  ;;  %p704_p7 = scmp.lt.s32.totalorder %s698_s14, %s698_s14 }
  0x2e   :  { %p705_p8 = por %p704_p7, %p703_p6 }
  0x30   :  { %p706_p9 = pnand %p705_p8, %p699_p5 }
  0x32   :  { %709 = shalt.err (!%p706_p9)
}
  0x33   :  { %51 = dma.hbm_to_vmem [thread:$0]  %s923_s3, 2048, %s46_s18, [#allocation6], %s763_s11, %s763_s11, %s764_s12  }
  0x34   :  { %s767_s16 = smov [#allocation8]   ;;  %s710_s21 = scalar_lea.hbm %s925_s5, 2048 }
  0x35   :  { %s59_s17 = sshll.u32 %s767_s16, 4  ;;  %p711_p10 = scmp.ne.s32.totalorder %s925_s5, %s710_s21  ;;  %s60_s17 = int_to_ptr.vmem [resolvable:$true] %s59_s17 }
  0x36   :  { %p714_p11 = scmp.lt.u32.totalorder %s710_s21, %s925_s5 }
  0x38   :  { %p716_p12 = pnand %p714_p11, %p711_p10 }
  0x3a   :  { %719 = shalt.err (!%p716_p12)
}
  0x3b   :  { %s720_s1 = scalar_lea.vmem %s60_s17, 2048  ;;  %p725_p0 = scmp.lt.s32.totalorder %s60_s17, %s60_s17 }
  0x3c   :  { %p721_p13 = scmp.ne.s32.totalorder %s60_s17, %s720_s1  ;;  %p726_p1 = scmp.lt.s32.totalorder %s720_s1, %s720_s1 }
  0x3e   :  { %p727_p2 = por %p726_p1, %p725_p0 }
  0x40   :  { %p728_p3 = pnand %p727_p2, %p721_p13 }
  0x42   :  { %731 = shalt.err (!%p728_p3)
}
  0x43   :  { %65 = dma.hbm_to_vmem [thread:$0]  %s925_s5, 2048, %s60_s17, [#allocation9], %s763_s11, %s763_s11, %s764_s12  }
  0x44   :  { %754 = dma.done.wait [#allocation3], 128  }
  0x45   :  { %755 = vsyncadd [#allocation3], 4294967168 }
  0x46   :  { %756 = dma.done.wait [#allocation6], 4096  }
  0x47   :  { %757 = vsyncadd [#allocation6], 4294963200 }
  0x48   :  { %758 = dma.done.wait [#allocation9], 2048  }
  0x49   :  { %759 = vsyncadd [#allocation9], 4294965248  ;;  %v768_v0 = vmov 0.0|0.0   ;;  %vm769_vm0 = vmmov 0   ;;  %v770_v1 = vmov 0.0   ;;  %v81_v2 = vld [vmem:[#allocation5] sm:$0xff] }
  0x4a   :  { %554 = vmatprep.subr.bf16.mxu0 %v768_v0  ;;  %481 = vmatprep.mubr.msk.f32.mxu0 %vm769_vm0, %v770_v1  ;;  %v82_v3 = vld [vmem:[#allocation5 + $0x8] sm:$0xff]  ;;  %v83_v4 = vld [vmem:[#allocation5 + $0x10] sm:$0xff]  ;;  %v84_v6 = vld [vmem:[#allocation5 + $0x18] sm:$0xff]  ;;  %s771_s27 = smov [#allocation10]  }
  0x4b   :  { %578 = vmatprep.subr.bf16.mxu1 %v768_v0  ;;  %516 = vmatprep.mubr.msk.f32.mxu1 %vm769_vm0, %v770_v1  ;;  %v555_v5 = vpack.c.bf16 %v82_v3, %v81_v2  ;;  %v558_v7 = vpack.c.bf16 %v84_v6, %v83_v4  ;;  %v85_v8 = vld [vmem:[#allocation5 + $0x20] sm:$0xff]  ;;  %v86_v9 = vld [vmem:[#allocation5 + $0x28] sm:$0xff]  ;;  %v177_v12 = vld [vmem:[#allocation7 + $0x10] sm:$0xff]  ;;  %s384_s28 = sshll.u32 %s771_s27, 4  ;;  %s385_s28 = int_to_ptr.vmem [resolvable:$true] %s384_s28 }
  0x4c   :  { %v175_v10 = vld [vmem:[#allocation7] sm:$0xff]  ;;  %v176_v11 = vld [vmem:[#allocation7 + $0x8] sm:$0xff]  ;;  %v178_v13 = vld [vmem:[#allocation7 + $0x18] sm:$0xff]  ;;  %v561_v14 = vpack.c.bf16 %v86_v9, %v85_v8  ;;  %s732_s29 = scalar_lea.vmem %s385_s28, 128  ;;  %p737_p5 = scmp.lt.s32.totalorder %s385_s28, %s385_s28 }
  0x4d   :  { %556 = vmatpush3.bf16.msra.mxu0 %v555_v5  ;;  %v579_v15 = vpack.c.bf16 %v176_v11, %v175_v10  ;;  %v87_v16 = vld [vmem:[#allocation5 + $0x30] sm:$0xff]  ;;  %v88_v17 = vld [vmem:[#allocation5 + $0x38] sm:$0xff]  ;;  %v582_v18 = vpack.c.bf16 %v178_v13, %v177_v12  ;;  %v179_v19 = vld [vmem:[#allocation7 + $0x20] sm:$0xff]  ;;  %p733_p4 = scmp.ne.s32.totalorder %s385_s28, %s732_s29  ;;  %p738_p6 = scmp.lt.s32.totalorder %s732_s29, %s732_s29 }
  0x4e   :  { %557 = vmatprep.subr.bf16.mxu0 %v768_v0  ;;  %v180_v20 = vld [vmem:[#allocation7 + $0x28] sm:$0xff]  ;;  %v564_v21 = vpack.c.bf16 %v88_v17, %v87_v16  ;;  %v89_v22 = vld [vmem:[#allocation5 + $0x40] sm:$0xff]  ;;  %v181_v25 = vld [vmem:[#allocation7 + $0x30] sm:$0xff] }
  0x4f   :  { %580 = vmatpush3.bf16.msra.mxu1 %v579_v15  ;;  %v90_v23 = vld [vmem:[#allocation5 + $0x48] sm:$0xff]  ;;  %v585_v24 = vpack.c.bf16 %v180_v20, %v179_v19  ;;  %v182_v26 = vld [vmem:[#allocation7 + $0x38] sm:$0xff]  ;;  %v91_v28 = vld [vmem:[#allocation5 + $0x50] sm:$0xff]  ;;  %p739_p7 = por %p738_p6, %p737_p5 }
  0x50   :  { %581 = vmatprep.subr.bf16.mxu1 %v768_v0  ;;  %v567_v27 = vpack.c.bf16 %v90_v23, %v89_v22  ;;  %v92_v29 = vld [vmem:[#allocation5 + $0x58] sm:$0xff]  ;;  %v588_v30 = vpack.c.bf16 %v182_v26, %v181_v25  ;;  %v183_v31 = vld [vmem:[#allocation7 + $0x40] sm:$0xff]  ;;  %v184_v32 = vld [vmem:[#allocation7 + $0x48] sm:$0xff] }
  0x51   :  { %559 = vmatpush3.bf16.msra.mxu0 %v558_v7  ;;  %v570_v33 = vpack.c.bf16 %v92_v29, %v91_v28  ;;  %v93_v34 = vld [vmem:[#allocation5 + $0x60] sm:$0xff]  ;;  %v94_v35 = vld [vmem:[#allocation5 + $0x68] sm:$0xff]  ;;  %v591_v36 = vpack.c.bf16 %v184_v32, %v183_v31  ;;  %v95_v38 = vld [vmem:[#allocation5 + $0x70] sm:$0xff]  ;;  %p740_p8 = pnand %p739_p7, %p733_p4 }
  0x52   :  { %560 = vmatprep.subr.bf16.mxu0 %v768_v0  ;;  %v573_v37 = vpack.c.bf16 %v94_v35, %v93_v34  ;;  %v96_v39 = vld [vmem:[#allocation5 + $0x78] sm:$0xff]  ;;  %v185_v42 = vld [vmem:[#allocation7 + $0x50] sm:$0xff]  ;;  %v187_v45 = vld [vmem:[#allocation7 + $0x60] sm:$0xff] }
  0x53   :  { %583 = vmatpush3.bf16.msra.mxu1 %v582_v18  ;;  %v576_v40 = vpack.c.bf16 %v96_v39, %v95_v38  ;;  %v80_v41 = vld [vmem:[#allocation2] sm:$0xff]  ;;  %v188_v46 = vld [vmem:[#allocation7 + $0x68] sm:$0xff]  ;;  %v189_v48 = vld [vmem:[#allocation7 + $0x70] sm:$0xff] }
  0x54   :  { %584 = vmatprep.subr.bf16.mxu1 %v768_v0  ;;  %v186_v43 = vld [vmem:[#allocation7 + $0x58] sm:$0xff]  ;;  %v597_v47 = vpack.c.bf16 %v188_v46, %v187_v45  ;;  %v282_v56 = vld [vmem:[#allocation8] sm:$0xff]  ;;  %v283_v57 = vld [vmem:[#allocation8 + $0x8] sm:$0xff] }
  0x55   :  { %562 = vmatpush3.bf16.msra.mxu0 %v561_v14  ;;  %v594_v44 = vpack.c.bf16 %v186_v43, %v185_v42  ;;  %v190_v49 = vld [vmem:[#allocation7 + $0x78] sm:$0xff]  ;;  %v603_v58 = vpack.c.bf16 %v283_v57, %v282_v56  ;;  %v284_v59 = vld [vmem:[#allocation8 + $0x10] sm:$0xff]  ;;  %v286_v62 = vld [vmem:[#allocation8 + $0x20] sm:$0xff] }
  0x56   :  { %563 = vmatprep.subr.bf16.mxu0 %v768_v0  ;;  %v600_v50 = vpack.c.bf16 %v190_v49, %v189_v48  ;;  %v395_v51 = vld [vmem:[%s922_s2] ss:$0 sm:$0xff]  ;;  %v287_v63 = vld [vmem:[#allocation8 + $0x28] sm:$0xff]  ;;  %v288_v2 = vld [vmem:[#allocation8 + $0x30] sm:$0xff] }
  0x57   :  { %586 = vmatpush3.bf16.msra.mxu1 %v585_v24  ;;  %v285_v60 = vld [vmem:[#allocation8 + $0x18] sm:$0xff]  ;;  %v290_v5 = vld [vmem:[#allocation8 + $0x40] sm:$0xff]  ;;  %v291_v6 = vld [vmem:[#allocation8 + $0x48] sm:$0xff] }
  0x58   :  { %587 = vmatprep.subr.bf16.mxu1 %v768_v0  ;;  %v606_v61 = vpack.c.bf16 %v285_v60, %v284_v59  ;;  %v289_v3 = vld [vmem:[#allocation8 + $0x38] sm:$0xff]  ;;  %v615_v7 = vpack.c.bf16 %v291_v6, %v290_v5  ;;  %v292_v8 = vld [vmem:[#allocation8 + $0x50] sm:$0xff]  ;;  %v294_v11 = vld [vmem:[#allocation8 + $0x60] sm:$0xff] }
  0x59   :  { %565 = vmatpush3.bf16.msra.mxu0 %v564_v21  ;;  %v612_v4 = vpack.c.bf16 %v289_v3, %v288_v2  ;;  %v293_v9 = vld [vmem:[#allocation8 + $0x58] sm:$0xff]  ;;  %v295_v12 = vld [vmem:[#allocation8 + $0x68] sm:$0xff]  ;;  %v296_v14 = vld [vmem:[#allocation8 + $0x70] sm:$0xff] }
  0x5a   :  { %566 = vmatprep.subr.bf16.mxu0 %v768_v0  ;;  %v618_v10 = vpack.c.bf16 %v293_v9, %v292_v8  ;;  %v621_v13 = vpack.c.bf16 %v295_v12, %v294_v11  ;;  %v297_v15 = vld [vmem:[#allocation8 + $0x78] sm:$0xff] }
  0x5b   :  { %589 = vmatpush3.bf16.msra.mxu1 %v588_v30  ;;  %v624_v16 = vpack.c.bf16 %v297_v15, %v296_v14  ;;  %v396_v17 = vld [vmem:[%s924_s4] ss:$0 sm:$0xff] }
  0x5c   :  { %590 = vmatprep.subr.bf16.mxu1 %v768_v0  ;;  %v397_v32 = vld [vmem:[%s926_s6] ss:$0 sm:$0xff] }
  0x5d   :  { %568 = vmatpush3.bf16.msra.mxu0 %v567_v27 }
  0x5e   :  { %569 = vmatprep.subr.bf16.mxu0 %v768_v0 }
  0x5f   :  { %592 = vmatpush3.bf16.msra.mxu1 %v591_v36 }
  0x60   :  { %593 = vmatprep.subr.bf16.mxu1 %v768_v0 }
  0x61   :  { %571 = vmatpush3.bf16.msra.mxu0 %v570_v33 }
  0x62   :  { %572 = vmatprep.subr.bf16.mxu0 %v768_v0 }
  0x63   :  { %595 = vmatpush3.bf16.msra.mxu1 %v594_v44 }
  0x64   :  { %596 = vmatprep.subr.bf16.mxu1 %v768_v0 }
  0x65   :  { %574 = vmatpush3.bf16.msra.mxu0 %v573_v37 }
  0x66   :  { %575 = vmatprep.subr.bf16.mxu0 %v768_v0 }
  0x67   :  { %598 = vmatpush3.bf16.msra.mxu1 %v597_v47 }
  0x68   :  { %599 = vmatprep.subr.bf16.mxu1 %v768_v0 }
  0x69   :  { %577 = vmatpush3.bf16.msra.mxu0 %v576_v40 }
  0x6a   :  { %602 = vmatprep.subr.bf16.mxu0 %v768_v0 }
  0x6b   :  { %601 = vmatpush3.bf16.msra.mxu1 %v600_v50 }
  0x6c   :  { %482 = vmatmul.mubr.f32.vlgmr.msra.gmra.mrb[0].mxu0 %v80_v41 }
  0x6d   :  { %551 = vmatprep.mubr.msk.f32.mxu0 %vm769_vm0, %v770_v1  ;;  %604 = vmatpush3.bf16.msra.mxu0 %v603_v58  ;;  %v609_v1 = vpack.c.bf16 %v287_v63, %v286_v62 }
  0x6e   :  { %605 = vmatprep.subr.bf16.mxu0 %v768_v0 }
  0x71   :  { %607 = vmatpush3.bf16.msra.mxu0 %v606_v61 }
  0x72   :  { %608 = vmatprep.subr.bf16.mxu0 %v768_v0 }
  0x75   :  { %610 = vmatpush3.bf16.msra.mxu0 %v609_v1 }
  0x76   :  { %611 = vmatprep.subr.bf16.mxu0 %v768_v0 }
  0x79   :  { %613 = vmatpush3.bf16.msra.mxu0 %v612_v4 }
  0x7a   :  { %614 = vmatprep.subr.bf16.mxu0 %v768_v0 }
  0x7d   :  { %616 = vmatpush3.bf16.msra.mxu0 %v615_v7 }
  0x7e   :  { %617 = vmatprep.subr.bf16.mxu0 %v768_v0 }
  0x81   :  { %619 = vmatpush3.bf16.msra.mxu0 %v618_v10 }
  0x82   :  { %620 = vmatprep.subr.bf16.mxu0 %v768_v0 }
  0x85   :  { %622 = vmatpush3.bf16.msra.mxu0 %v621_v13 }
  0x86   :  { %623 = vmatprep.subr.bf16.mxu0 %v768_v0 }
  0x89   :  { %625 = vmatpush3.bf16.msra.mxu0 %v624_v16 }
 0x13f   :  { %v170_v52 = vpop.f32.mrb[0].mxu0 }
 0x140   :  { %v171_v53 = vadd.f32 %v395_v51, %v170_v52  ;;  %v483_v54 = vpop.f32.mrb[1].mxu0 }
 0x142   :  { %636 = vtanh.f32 %v171_v53 }
 0x14c   :  { %v637_v55 = vpop.eup %636 }
 0x14d   :  { %517 = vmatmul.mubr.f32.vlgmr.msra.gmra.mrb[0].mxu1 %v637_v55 }
 0x220   :  { %v264_v18 = vpop.f32.mrb[0].mxu1 }
 0x221   :  { %v265_v19 = vadd.f32 %v396_v17, %v264_v18  ;;  %v518_v20 = vpop.f32.mrb[1].mxu1 }
 0x223   :  { %v268_v21 = vmin.f32 %v265_v19, 50.0  ;;  %vm280_vm2 = vcmp.gt.f32.partialorder %v265_v19, 50.0 }
 0x225   :  { %v269_v22 = vmul.f32 1.442695, %v268_v21 }
 0x227   :  { %638 = vpow2.f32 %v269_v22 }
 0x231   :  { %v639_v23 = vpop.eup %638 }
 0x232   :  { %v271_v24 = vadd.f32 1.0, %v639_v23  ;;  %v274_v25 = vmul.f32 -0.5, %v639_v23  ;;  %v277_v27 = vand.u32 2147483647, %v639_v23 }
 0x234   :  { %640 = vlog2.f32 %v271_v24  ;;  %v275_v26 = vadd.f32 1.0, %v274_v25  ;;  %vm278_vm1 = vcmp.lt.f32.partialorder %v277_v27, 0.0004427343 }
 0x236   :  { %v276_v0 = vmul.f32 %v639_v23, %v275_v26 }
 0x23e   :  { %v641_v28 = vpop.eup %640 }
 0x23f   :  { %v273_v29 = vmul.f32 0.6931472, %v641_v28 }
 0x241   :  { %v279_v30 = vsel %vm278_vm1, %v276_v0, %v273_v29 }
 0x242   :  { %v281_v31 = vsel %vm280_vm2, %v265_v19, %v279_v30 }
 0x243   :  { %552 = vmatmul.mubr.f32.vlgmr.msra.gmra.mrb[2].mxu0 %v281_v31 }
 0x316   :  { %v371_v33 = vpop.f32.mrb[2].mxu0 }
 0x317   :  { %v372_v34 = vadd.f32 %v397_v32, %v371_v33  ;;  %v553_v35 = vpop.f32.mrb[3].mxu0 }
 0x319   :  { %642 = vtanh.f32 %v372_v34 }
 0x323   :  { %v643_v36 = vpop.eup %642 }
 0x324   :  { %v376_v37 = vmul.f32 1.5, %v643_v36 }
 0x326   :  { %377 = vst [vmem:[#allocation10] sm:$0xff] %v376_v37 }
 0x327   :  { %743 = shalt.err (!%p740_p8)
}
 0x328   :  { %s744_s6 = scalar_lea.hbm %s927_s7, 128 }
 0x329   :  { %p745_p9 = scmp.ne.s32.totalorder %s927_s7, %s744_s6  ;;  %p748_p10 = scmp.lt.u32.totalorder %s744_s6, %s927_s7 }
 0x32b   :  { %p750_p11 = pnand %p748_p10, %p745_p9 }
 0x32d   :  { %753 = shalt.err (!%p750_p11)
}
 0x32e   :  { %387 = dma.vmem_to_hbm [thread:$0]  %s385_s28, 128, %s927_s7, [#allocation4]  }
 0x32f   :  { %760 = dma.done.wait [#allocation4], 128  }
 0x330   :  { %761 = vsyncadd [#allocation4], 4294967168 }
 0x331   :  { %391 = vsyncpa [#allocation3], 1 }
 0x332   :  { %392 = vsyncpa [#allocation6], 1 }
 0x333   :  { %393 = vsyncpa [#allocation9], 1 }
 0x334   :  { %394 = vsyncpa [#allocation4], 1 }

</bundles_post_ra>
